<compile_context>
chip_gen: v7x
topology: tpu7x:2x2x1
jax: 0.10.0
libtpu: 0.0.40
codegen_flags: <defaults>
</compile_context>

<pallas_src>
import functools
import math

import jax
import jax.numpy as jnp
from jax.experimental import pallas as pl
from jax.experimental.pallas import tpu as pltpu

BN_EPS = 1e-5
EXPANSION = 1                         # BasicBlock expansion
TM_MAX = 256                          # row tile for the im2col matmul path
TN_MAX = 256                          # col tile for the im2col matmul path
TN_CONV = 256                         # output-channel tile for the fused conv kernel
VMEM_LIMIT_BYTES = 32 * 1024 * 1024   # > v5e 16 MiB default, < v7x 64 MiB physical


def _round_up(x, m):
    return ((x + m - 1) // m) * m


# ----------------------------------------------------------------------------
# Pallas kernels
# ----------------------------------------------------------------------------

def _fused_conv_kernel(*refs, taps, stride, wq, relu, has_res):
    """Fused conv + BN-bias (+residual) (+ReLU).

    x_ref : (s*s, Hq*Wq, Cin)  bf16   stride-phase-decomposed padded activation
    w_ref : (kh*kw, Cin, tn)   bf16   BN-scale-folded weights (one slab per tap)
    b_ref : (1, tn)            f32    BN bias
    r_ref : (1, rows, tn)      bf16   optional residual (already padded/laid out)
    o_ref : (1, rows, tn)      bf16   rows = Ho*Wq (Wq-Wo garbage cols sliced in JAX)
    """
    if has_res:
        x_ref, w_ref, b_ref, r_ref, o_ref = refs
    else:
        x_ref, w_ref, b_ref, o_ref = refs
        r_ref = None
    rows = o_ref.shape[1]
    acc = None
    for t, (ki, kj) in enumerate(taps):
        ph = (ki % stride) * stride + (kj % stride)      # which stride phase
        off = (ki // stride) * wq + (kj // stride)       # flat row offset of the tap
        xt = x_ref[ph, pl.ds(off, rows), :]              # (rows, Cin) contiguous load
        part = jnp.dot(xt, w_ref[t], preferred_element_type=jnp.float32)
        acc = part if acc is None else acc + part
    y = acc + b_ref[...]
    if r_ref is not None:
        y = y + r_ref[0].astype(jnp.float32)
    if relu:
        y = jnp.maximum(y, 0.0)
    o_ref[0] = y.astype(o_ref.dtype)


def _matmul_bias_kernel(a_ref, w_ref, b_ref, o_ref, *, relu):
    # a: (tm, Kp) bf16, w: (Kp, tn) bf16, b: (1, tn) f32 -> f32 epilogue, bf16 store.
    acc = jnp.dot(a_ref[...], w_ref[...], preferred_element_type=jnp.float32)
    y = acc + b_ref[...]
    if relu:
        y = jnp.maximum(y, 0.0)
    o_ref[...] = y.astype(o_ref.dtype)


def _max_reduce_kernel(*refs):
    # refs = (slice_0, ..., slice_{kk-1}, out): running max over window positions.
    o_ref = refs[-1]
    m = refs[0][...]
    for r in refs[1:-1]:
        m = jnp.maximum(m, r[...])
    o_ref[...] = m


def _gap_linear_kernel(x_ref, w_ref, b_ref, o_ref):
    # Global average pool over HW (f32), then bf16 MXU matmul, f32 epilogue.
    pooled = jnp.mean(x_ref[...].astype(jnp.float32), axis=1)        # (N, C)
    o_ref[...] = (jnp.dot(pooled.astype(jnp.bfloat16), w_ref[...],
                          preferred_element_type=jnp.float32) + b_ref[...])


# ----------------------------------------------------------------------------
# Kernel wrappers
# ----------------------------------------------------------------------------

def matmul_bn(a, w, bias, relu, tm, tn):
    """a: (Mp, Kp) bf16, w: (Kp, Np) bf16 (BN folded), bias: (1, Np) f32 -> bf16."""
    Mp, Kp = a.shape
    _, Np = w.shape
    grid = (Mp // tm, Np // tn)
    cost = pl.CostEstimate(
        flops=2 * Mp * Kp * Np, transcendentals=0,
        bytes_accessed=int(a.size * 2 + w.size * 2 * grid[0] + bias.size * 4
                           + Mp * Np * 2))
    return pl.pallas_call(
        functools.partial(_matmul_bias_kernel, relu=relu),
        out_shape=jax.ShapeDtypeStruct((Mp, Np), jnp.bfloat16),
        grid_spec=pltpu.PrefetchScalarGridSpec(
            num_scalar_prefetch=0,
            grid=grid,
            in_specs=[pl.BlockSpec((tm, Kp), lambda i, j: (i, 0)),
                      pl.BlockSpec((Kp, tn), lambda i, j: (0, j)),
                      pl.BlockSpec((1, tn), lambda i, j: (0, j))],
            out_specs=pl.BlockSpec((tm, tn), lambda i, j: (i, j)),
        ),
        compiler_params=pltpu.CompilerParams(
            dimension_semantics=("parallel", "parallel"),
            vmem_limit_bytes=VMEM_LIMIT_BYTES),
        cost_estimate=cost,
    )(a, w, bias)


def _im2col(x, kh, kw, stride, padding):
    """x: (N, H, W, C) bf16 -> patches (N*Ho*Wo, kh*kw*C).  Stem-only."""
    N, H, W, C = x.shape
    Ho = (H + 2 * padding - kh) // stride + 1
    Wo = (W + 2 * padding - kw) // stride + 1
    xp = jnp.pad(x, ((0, 0), (padding, padding), (padding, padding), (0, 0)))
    cols = []
    for i in range(kh):
        for j in range(kw):
            cols.append(
                xp[:, i:i + stride * (Ho - 1) + 1:stride,
                      j:j + stride * (Wo - 1) + 1:stride, :])
    patches = jnp.stack(cols, axis=3).reshape(N * Ho * Wo, kh * kw * C)
    return patches, N, Ho, Wo


def conv_bn_matmul(x, cw, stride, padding, relu):
    """im2col + MXU matmul path (stem conv only, Cin < 16)."""
    kh, kw, Cout = cw["kh"], cw["kw"], cw["cout"]
    wp, bp = cw["w"], cw["b"]
    Kp, Np = wp.shape
    patches, N, Ho, Wo = _im2col(x, kh, kw, stride, padding)
    M, K = patches.shape
    tm = min(TM_MAX, _round_up(M, 16))
    Mp = _round_up(M, tm)
    tn = min(TN_MAX, Np)
    if M <= 8:
        tn = Np                      # tiny-M: one wide lane-dense store
    if Np % tn:
        tn = 128
    a = jnp.pad(patches, ((0, Mp - M), (0, Kp - K)))
    y = matmul_bn(a, wp, bp, relu, tm, tn)
    return y[:M, :Cout].reshape(N, Ho, Wo, Cout)


def conv_bn_fused(x, cw, stride, padding, relu, residual=None):
    """Fully fused conv + BN(eval) (+residual) (+ReLU); no HBM im2col."""
    kh, kw, Cout = cw["kh"], cw["kw"], cw["cout"]
    wp, bp = cw["w"], cw["b"]
    Coutp = wp.shape[-1]

    # 1x1 strided conv (downsample): pre-subsample once, then it is stride-1.
    if kh == 1 and kw == 1 and stride > 1:
        x = x[:, ::stride, ::stride, :]
        stride = 1

    N, H, W, Cin = x.shape
    s = stride
    Ho = (H + 2 * padding - kh) // s + 1
    Wo = (W + 2 * padding - kw) // s + 1
    hi_max, wj_max = (kh - 1) // s, (kw - 1) // s
    extra = 1 if wj_max > 0 else 0            # spare phase row for shifted reads
    Hq, Wq = Ho + hi_max + extra, Wo + wj_max
    rows = Ho * Wq                            # output rows incl. Wq-Wo garbage cols

    # Zero-pad so every stride-phase is exactly (Hq, Wq); original at offset (p, p).
    pad_b = s * Hq - H - padding
    pad_r = s * Wq - W - padding
    xpad = jnp.pad(x, ((0, 0), (padding, pad_b), (padding, pad_r), (0, 0)))
    if s == 1:
        xph = xpad.reshape(N, Hq * Wq, Cin)
    else:
        xph = (xpad.reshape(N, Hq, s, Wq, s, Cin)
               .transpose(0, 2, 4, 1, 3, 5)
               .reshape(N * s * s, Hq * Wq, Cin))
    ss = s * s

    tn = min(TN_CONV, Coutp)
    if Coutp % tn:
        tn = 128
    grid = (N, Coutp // tn)                   # batch axis keeps >=2 parallel steps
    taps = tuple((ki, kj) for ki in range(kh) for kj in range(kw))

    in_specs = [
        pl.BlockSpec((ss, Hq * Wq, Cin), lambda n, j: (n, 0, 0)),
        pl.BlockSpec((kh * kw, Cin, tn), lambda n, j: (0, 0, j)),
        pl.BlockSpec((1, tn), lambda n, j: (0, j)),
    ]
    args = [xph, wp, bp]
    has_res = residual is not None
    if has_res:
        C_r = residual.shape[-1]
        r = jnp.pad(residual.astype(jnp.bfloat16),
                    ((0, 0), (0, 0), (0, Wq - Wo), (0, Coutp - C_r)))
        r = r.reshape(N, rows, Coutp)
        in_specs.append(pl.BlockSpec((1, rows, tn), lambda n, j: (n, 0, j)))
        args.append(r)

    kernel = functools.partial(_fused_conv_kernel, taps=taps, stride=s, wq=Wq,
                               relu=relu, has_res=has_res)
    flops = 2 * N * rows * kh * kw * Cin * Coutp
    bytes_accessed = (xph.size * 2 * grid[1] + wp.size * 2 + bp.size * 4
                      + N * rows * Coutp * 2 * (2 if has_res else 1))

    out = pl.pallas_call(
        kernel,
        out_shape=jax.ShapeDtypeStruct((N, rows, Coutp), jnp.bfloat16),
        grid_spec=pltpu.PrefetchScalarGridSpec(
            num_scalar_prefetch=0,
            grid=grid,
            in_specs=in_specs,
            out_specs=pl.BlockSpec((1, rows, tn), lambda n, j: (n, 0, j)),
        ),
        compiler_params=pltpu.CompilerParams(
            dimension_semantics=("parallel", "parallel"),
            vmem_limit_bytes=VMEM_LIMIT_BYTES),
        cost_estimate=pl.CostEstimate(flops=int(flops), transcendentals=0,
                                      bytes_accessed=int(bytes_accessed)),
    )(*args)
    return out.reshape(N, Ho, Wq, Coutp)[:, :, :Wo, :Cout]


def conv_bn(x, cw, stride, padding, relu, residual=None):
    if cw["fused"]:
        return conv_bn_fused(x, cw, stride, padding, relu, residual)
    assert residual is None
    return conv_bn_matmul(x, cw, stride, padding, relu)


def maxpool2d(x, k=3, stride=2, padding=1):
    N, H, W, C = x.shape
    Ho = (H + 2 * padding - k) // stride + 1
    Wo = (W + 2 * padding - k) // stride + 1
    neg = jnp.finfo(x.dtype).min
    xp = jnp.pad(x, ((0, 0), (padding, padding), (padding, padding), (0, 0)),
                 constant_values=neg)
    total = N * Ho * Wo * C
    shp = (total // 128, 128) if total % 128 == 0 else (N * Ho * Wo, C)
    slices = []
    for i in range(k):
        for j in range(k):
            s = xp[:, i:i + stride * (Ho - 1) + 1:stride,
                      j:j + stride * (Wo - 1) + 1:stride, :]
            slices.append(s.reshape(shp))
    out = pl.pallas_call(
        _max_reduce_kernel,
        out_shape=jax.ShapeDtypeStruct(shp, x.dtype),
    )(*slices)
    return out.reshape(N, Ho, Wo, C)


def gap_linear(x, w, b, ncls):
    # x: (N, HW, C) bf16, w: (C, NCp) bf16, b: (1, NCp) f32 -> (N, ncls) f32
    N = x.shape[0]
    ncp = w.shape[1]
    out = pl.pallas_call(
        _gap_linear_kernel,
        out_shape=jax.ShapeDtypeStruct((N, ncp), jnp.float32),
    )(x, w, b)
    return out[:, :ncls]


# ----------------------------------------------------------------------------
# Parameter construction (deterministic, mirrors the PyTorch __init__)
# ----------------------------------------------------------------------------

class _ParamGen:
    def __init__(self, key):
        self.key = key

    def next(self):
        self.key, k = jax.random.split(self.key)
        return k


def _init_conv(key, cout, cin, kh, kw):
    n = kh * kw * cout
    std = math.sqrt(2.0 / n)
    return jax.random.normal(key, (cout, cin, kh, kw), jnp.float32) * std


def _init_bn(c):
    # gamma, beta, running_mean, running_var
    return (jnp.ones((c,), jnp.float32), jnp.zeros((c,), jnp.float32),
            jnp.zeros((c,), jnp.float32), jnp.ones((c,), jnp.float32))


def _make_basic_block(pg, inplanes, planes, stride):
    blk = {
        "stride": stride,
        "conv1": _init_conv(pg.next(), planes, inplanes, 3, 3),
        "bn1": _init_bn(planes),
        "conv2": _init_conv(pg.next(), planes, planes, 3, 3),
        "bn2": _init_bn(planes),
        "downsample": None,
    }
    if stride != 1 or inplanes != planes * EXPANSION:
        blk["downsample"] = (
            _init_conv(pg.next(), planes * EXPANSION, inplanes, 1, 1),
            _init_bn(planes * EXPANSION),
        )
    return blk


def _make_layer(pg, inplanes, planes, blocks, stride=1):
    layer = [_make_basic_block(pg, inplanes, planes, stride)]
    inplanes = planes * EXPANSION
    for _ in range(1, blocks):
        layer.append(_make_basic_block(pg, inplanes, planes, 1))
    return layer, inplanes


def init_resnet(key, layers, in_channels, num_classes):
    pg = _ParamGen(key)
    params = {}
    params["conv1"] = _init_conv(pg.next(), 64, in_channels, 7, 7)
    params["bn1"] = _init_bn(64)
    inplanes = 64
    params["layer1"], inplanes = _make_layer(pg, inplanes, 64, layers[0])
    params["layer2"], inplanes = _make_layer(pg, inplanes, 128, layers[1], 2)
    params["layer3"], inplanes = _make_layer(pg, inplanes, 256, layers[2], 2)
    params["layer4"], inplanes = _make_layer(pg, inplanes, 512, layers[3], 2)
    params["layer5"], inplanes = _make_layer(pg, inplanes, 512, 2, 2)
    params["layer6"], inplanes = _make_layer(pg, inplanes, 512, 2, 2)
    fan_in = 512 * EXPANSION
    bound = 1.0 / math.sqrt(fan_in)
    params["fc_w"] = jax.random.uniform(
        pg.next(), (fan_in, num_classes), jnp.float32, -bound, bound)
    params["fc_b"] = jax.random.uniform(
        pg.next(), (num_classes,), jnp.float32, -bound, bound)
    return params


def _prep_conv_bn(w_oihw, bn):
    """Fold eval-mode BN into the conv weight and lay out for the kernels (once)."""
    Cout, Cin, kh, kw = w_oihw.shape
    gamma, beta, mean, var = bn
    scale = gamma / jnp.sqrt(var + BN_EPS)
    bias = beta - mean * scale
    Coutp = _round_up(Cout, 128)
    w = jnp.transpose(w_oihw, (2, 3, 1, 0)) * scale          # (kh, kw, Cin, Cout)
    fused = Cin >= 16                                        # stem (Cin=3) -> im2col path
    if fused:
        w = w.reshape(kh * kw, Cin, Cout)
        w = jnp.pad(w, ((0, 0), (0, 0), (0, Coutp - Cout)))
    else:
        K = kh * kw * Cin
        Kp = _round_up(K, 16)                                # bf16 packed-sublane granule
        w = w.reshape(K, Cout)
        w = jnp.pad(w, ((0, Kp - K), (0, Coutp - Cout)))
    b = jnp.pad(bias, (0, Coutp - Cout)).reshape(1, Coutp).astype(jnp.float32)
    return {"w": w.astype(jnp.bfloat16), "b": b, "kh": kh, "kw": kw,
            "cout": Cout, "fused": fused}


def prepare_params(raw):
    """One-time conversion of raw (PyTorch-like) params to kernel-ready layouts."""
    p = {"conv1": _prep_conv_bn(raw["conv1"], raw["bn1"])}
    for name in ("layer1", "layer2", "layer3", "layer4", "layer5", "layer6"):
        blks = []
        for blk in raw[name]:
            b = {"stride": blk["stride"],
                 "conv1": _prep_conv_bn(blk["conv1"], blk["bn1"]),
                 "conv2": _prep_conv_bn(blk["conv2"], blk["bn2"]),
                 "downsample": None}
            if blk["downsample"] is not None:
                dw, dbn = blk["downsample"]
                b["downsample"] = _prep_conv_bn(dw, dbn)
            blks.append(b)
        p[name] = blks
    ncls = raw["fc_w"].shape[1]
    ncp = _round_up(ncls, 128)
    p["fc_w"] = jnp.pad(raw["fc_w"], ((0, 0), (0, ncp - ncls))).astype(jnp.bfloat16)
    p["fc_b"] = jnp.pad(raw["fc_b"], (0, ncp - ncls)).reshape(1, ncp).astype(jnp.float32)
    p["num_classes"] = ncls
    return p


# ----------------------------------------------------------------------------
# Forward pass
# ----------------------------------------------------------------------------

def basic_block_forward(x, blk):
    out = conv_bn(x, blk["conv1"], blk["stride"], 1, relu=True)
    if blk["downsample"] is not None:
        identity = conv_bn(x, blk["downsample"], blk["stride"], 0, relu=False)
    else:
        identity = x
    # conv2 + bn2 + residual add + ReLU fused in one Pallas call.
    return conv_bn(out, blk["conv2"], 1, 1, relu=True, residual=identity)


def resnet_forward(x_nchw, params):
    x = jnp.transpose(x_nchw, (0, 2, 3, 1)).astype(jnp.bfloat16)   # NCHW -> NHWC bf16
    x = conv_bn(x, params["conv1"], stride=2, padding=3, relu=True)
    x = maxpool2d(x, k=3, stride=2, padding=1)
    for name in ("layer1", "layer2", "layer3", "layer4", "layer5", "layer6"):
        for blk in params[name]:
            x = basic_block_forward(x, blk)
    N, H, W, C = x.shape
    return gap_linear(x.reshape(N, H * W, C), params["fc_w"], params["fc_b"],
                      params["num_classes"])


# ----------------------------------------------------------------------------
# Demo
# ----------------------------------------------------------------------------

if __name__ == "__main__":
    key = jax.random.PRNGKey(0)
    k_params, k_x = jax.random.split(key)

    # ResNet(block=BasicBlock, layers=[1, 1, 1, 1], in_channels=3, num_classes=10)
    raw = init_resnet(k_params, layers=[1, 1, 1, 1], in_channels=3, num_classes=10)
    params = prepare_params(raw)

    x = jax.random.normal(k_x, (2, 3, 32, 32), jnp.float32)   # NCHW, like PyTorch
    logits = resnet_forward(x, params)
    jax.block_until_ready(logits)

    assert logits.shape == (2, 10)
    print("KERNEL_OK")
</pallas_src>

<mosaic_0001>
module attributes {stable_mosaic.version = 11 : i64} {
  func.func @_matmul_bias_kernel(%arg0: i32, %arg1: i32, %arg2: memref<256x160xbf16, #tpu.memory_space<vmem>>, %arg3: memref<160x128xbf16, #tpu.memory_space<vmem>>, %arg4: memref<1x128xf32, #tpu.memory_space<vmem>>, %arg5: memref<256x128xbf16, #tpu.memory_space<vmem>>) attributes {dimension_semantics = [#tpu.dimension_semantics<parallel>, #tpu.dimension_semantics<parallel>], iteration_bounds = array<i64: 2, 1>, scalar_prefetch = 0 : i64, scratch_operands = 0 : i64, tpu.core_type = #tpu.core_type<tc>, window_params = [{transform_indices = @transform_0, window_bounds = array<i64: 256, 160>}, {transform_indices = @transform_1, window_bounds = array<i64: 160, 128>}, {transform_indices = @transform_2, window_bounds = array<i64: 1, 128>}, {transform_indices = @transform_3, window_bounds = array<i64: 256, 128>}]} {
    %c0 = arith.constant 0 : index
    %c0_0 = arith.constant 0 : index
    %0 = vector.load %arg2[%c0, %c0_0] : memref<256x160xbf16, #tpu.memory_space<vmem>>, vector<256x160xbf16>
    %c0_1 = arith.constant 0 : index
    %c0_2 = arith.constant 0 : index
    %1 = vector.load %arg3[%c0_1, %c0_2] : memref<160x128xbf16, #tpu.memory_space<vmem>>, vector<160x128xbf16>
    %cst = arith.constant dense<0.000000e+00> : vector<256x128xf32>
    %2 = tpu.matmul %0, %1, %cst {dimension_numbers = #tpu.dot_dimension_numbers<[1], [0], [0], [1], [0, 0, 1, 1], [], []>} : vector<256x160xbf16>, vector<160x128xbf16>, vector<256x128xf32> -> vector<256x128xf32>
    %c0_3 = arith.constant 0 : index
    %c0_4 = arith.constant 0 : index
    %3 = vector.load %arg4[%c0_3, %c0_4] : memref<1x128xf32, #tpu.memory_space<vmem>>, vector<1x128xf32>
    %4 = vector.broadcast %3 : vector<1x128xf32> to vector<256x128xf32>
    %5 = arith.addf %2, %4 : vector<256x128xf32>
    %cst_5 = arith.constant 0.000000e+00 : f32
    %6 = vector.broadcast %cst_5 : f32 to vector<256x128xf32>
    %7 = arith.maximumf %5, %6 : vector<256x128xf32>
    %8 = arith.truncf %7 : vector<256x128xf32> to vector<256x128xbf16>
    %c0_6 = arith.constant 0 : index
    %c0_7 = arith.constant 0 : index
    %9 = vector.load %arg5[%c0_6, %c0_7] : memref<256x128xbf16, #tpu.memory_space<vmem>>, vector<256x128xbf16>
    tpu.vector_store %arg5[%c0_6, %c0_7], %8 {strides = array<i32>} : memref<256x128xbf16, #tpu.memory_space<vmem>>, vector<256x128xbf16>,
    return
  }
  func.func @transform_0(%arg0: i32, %arg1: i32) -> (i32, i32) {
    %c0_i32 = arith.constant 0 : i32
    %c0_i32_0 = arith.constant 0 : i32
    return %arg0, %c0_i32 : i32, i32
  }
  func.func @transform_1(%arg0: i32, %arg1: i32) -> (i32, i32) {
    %c0_i32 = arith.constant 0 : i32
    %c0_i32_0 = arith.constant 0 : i32
    return %c0_i32, %arg1 : i32, i32
  }
  func.func @transform_2(%arg0: i32, %arg1: i32) -> (i32, i32) {
    %c0_i32 = arith.constant 0 : i32
    %c0_i32_0 = arith.constant 0 : i32
    return %c0_i32, %arg1 : i32, i32
  }
  func.func @transform_3(%arg0: i32, %arg1: i32) -> (i32, i32) {
    %c0_i32 = arith.constant 0 : i32
    return %arg0, %arg1 : i32, i32
  }
}

</mosaic_0001>

<bundles_post_ra>
// kernel: tpu_custom_call.1
= control target key start
LH: loop header
LB: loop body
LE: loop exit
PB: predicated region body
PF: predicated region fallthrough
CT: control target
= control target key end

     0   :  { %8 = vsyncpa [#allocation3], 0  ;;  %s1730_s0 = inlined_call_operand.vmem [shape: bf16[512,160], index: 0, kind: input, shape index: {}]   ;;  %s1731_s1 = inlined_call_operand.vmem [shape: bf16[160,128], index: 1, kind: input, shape index: {}]   ;;  %s1732_s2 = inlined_call_operand.vmem [shape: f32[1,128], index: 2, kind: input, shape index: {}]   ;;  %s1733_s3 = inlined_call_operand.hbm [shape: bf16[512,128], index: 3, kind: output, shape index: {}]  }
   0x1   :  { %10 = vsyncpa [#allocation3 + $0x1], 0  ;;  %s1476_s12 = smov 0   ;;  %s1478_s13 = smov 0  }
   0x2   :  { %s1480_s14 = smov 0   ;;  %s1482_s15 = smov 0  }
   0x3   :  { %s1484_s16 = smov 0   ;;  %s1486_s17 = smov 0  }
   0x4 LB: > { %s1000_s18 = sadd.s32 4294967295, %s1450_s17   ;;  %s1001_s19 = sadd.s32 4294967294, %s1450_s17   ;;  %s1450_s17 = sphi %s1486_s17, %s16_s17   ;;  %s1446_s16 = sphi %s1484_s16, %s1740_s16   ;;  %s1442_s15 = sphi %s1482_s15, %s1739_s15   ;;  %s1438_s14 = sphi %s1480_s14, %s1738_s14   ;;  %s1434_s13 = sphi %s1478_s13, %s1737_s13   ;;  %s1430_s12 = sphi %s1476_s12, %s1736_s12  }
   0x5   : > { %s28_s20 = sadd.s32 1, %s1446_s16  ;;  %s115_s21 = sadd.s32 1, %s1438_s14 }
   0x6   : > { %p30_p0 = scmp.ge.s32.totalorder %s28_s20, 2  ;;  %p125_p1 = scmp.ne.s32.totalorder %s1438_s14, %s1434_s13 }
   0x7   : > { %p126_p2 = scmp.eq.s32.totalorder %s1000_s18, 1  ;;  %p131_p3 = scmp.ne.s32.totalorder %s1434_s13, %s1430_s12 }
   0x8   : > { %s1742_s20 = smov (%p30_p0, %s28_s20), 0  ;;  %p132_p5 = scmp.eq.s32.totalorder %s1001_s19, 1 }
   0x9   : > { %p1516_p4 = por %p126_p2, %p125_p1  ;;  %s110_s23 = ssub.s32 %s1446_s16, %s1742_s20 }
   0xa   : > { %p1006_p6 = scmp.ge.s32.totalorder %s1450_s17, 1  ;;  %p113_p7 = scmp.eq.s32.totalorder %s110_s23, 0 }
   0xb   : > { %p1523_p8 = por %p132_p5, %p131_p3  ;;  %p173_p9 = scmp.lt.s32.totalorder %s1450_s17, 3 }
   0xc   : > { %s1529_s25 = scalar_select %p113_p7, %s1438_s14, %s115_s21  }
   0xd   : > { %p174_p10 = pnand %p1006_p6, %p173_p9 }
   0xe   : > { %v1314_v0 = vld [vmem:[%s1731_s1] sm:$0xff] (!%p174_p10)   ;;  %v1452_v1 = vmov (!%p174_p10), 0   ;;  %s1008_s28 = sshll.u32 (!%p174_p10), %s1442_s15, 5  ;;  %v1315_v2 = vld [vmem:[%s1731_s1 + $0x8] sm:$0xff] (!%p174_p10)   ;;  %v1316_v3 = vld [vmem:[%s1731_s1 + $0x10] sm:$0xff] (!%p174_p10)   ;;  %vm484_vm0 = vcmask (!%p174_p10), 261120  }
   0xf   : > { %177 = sbr.rel (%p174_p10) target bundleno = 346 (0x15a), region = 32  ;;  %533 = vmatprep.subr.bf16.mxu0 (!%p174_p10), %v1452_v1  ;;  %1236 = vmatprep.subr.bf16.mxu1 (!%p174_p10), %v1452_v1  ;;  %p206_p11 = scmp.lt.s32.totalorder (!%p174_p10), %s1008_s28, 63  ;;  %v1317_v4 = vld [vmem:[%s1731_s1 + $0x18] sm:$0xff] (!%p174_p10)   ;;  %v1318_v7 = vld [vmem:[%s1731_s1 + $0x20] sm:$0xff] (!%p174_p10)   ;;  %v1319_v8 = vld [vmem:[%s1731_s1 + $0x28] sm:$0xff] (!%p174_p10)  }
  0x10   : > { %534 = vmatpush1.bf16.msra.mxu0 (!%p174_p10), %v1314_v0  ;;  %1246 = vmatpush1.bf16.msra.mxu1 (!%p174_p10), %v1314_v0  ;;  %v1320_v9 = vld [vmem:[%s1731_s1 + $0x30] sm:$0xff] (!%p174_p10)   ;;  %v1321_v10 = vld [vmem:[%s1731_s1 + $0x38] sm:$0xff] (!%p174_p10)   ;;  %v1322_v11 = vld [vmem:[%s1731_s1 + $0x40] sm:$0xff] (!%p174_p10)   ;;  %s202_s10 = sand.u32 (!%p174_p10), 1, %s1434_s13   ;;  %s1140_s18 = sshll.u32 (!%p174_p10), %s1442_s15, 11 }
  0x11   : > { %535 = vmatprep.subr.bf16.mxu0 (!%p174_p10), %v1452_v1  ;;  %1237 = vmatprep.subr.bf16.mxu1 (!%p174_p10), %v1452_v1  ;;  %v1323_v12 = vld [vmem:[%s1731_s1 + $0x48] sm:$0xff] (!%p174_p10)   ;;  %v1618_v43 = vld [vmem:[%s1732_s2] ss:$0 sm:$0xff] (!%p174_p10)  ;;  %s1676_s26 = scalar_lea.hbm (!%p174_p10), %s1733_s3, %s1140_s18  ;;  %s1684_s15 = scalar_lea.sflag (!%p174_p10), [#allocation3], %s202_s10 }
  0x14   : > { %536 = vmatpush1.bf16.msra.mxu0 (!%p174_p10), %v1315_v2  ;;  %1247 = vmatpush1.bf16.msra.mxu1 (!%p174_p10), %v1315_v2 }
  0x15   : > { %537 = vmatprep.subr.bf16.mxu0 (!%p174_p10), %v1452_v1  ;;  %1238 = vmatprep.subr.bf16.mxu1 (!%p174_p10), %v1452_v1 }
  0x16   : > { %s1744_s28 = smov (!%p206_p11, %s1008_s28), 63 }
  0x17   : > { %s1107_s6 = sshll.u32 %s1744_s28, 3  ;;  %s1453_s28 = smov [#allocation2]  }
  0x18   : > { %s1544_s9 = scalar_lea.vmem %s1730_s0, %s1107_s6  ;;  %538 = vmatpush1.bf16.msra.mxu0 %v1316_v3  ;;  %1248 = vmatpush1.bf16.msra.mxu1 %v1316_v3  ;;  %s1376_s29 = sshll.u32 %s1453_s28, 4  ;;  %s1377_s29 = int_to_ptr.vmem [resolvable:$false] %s1376_s29 }
  0x19   : > { %539 = vmatprep.subr.bf16.mxu0 %v1452_v1  ;;  %1239 = vmatprep.subr.bf16.mxu1 %v1452_v1  ;;  %v1326_v5 = vld [vmem:[%s1544_s9 + $0x4] ss:$8 sps:$4 sm:$0xff]   ;;  %v1324_v13 = vld [vmem:[%s1544_s9] ss:$8 sps:$4 sm:$0xff]   ;;  %v1330_v15 = vld [vmem:[%s1544_s9 + $0x14] ss:$8 sps:$4 sm:$0xff]  }
  0x1a   : > { %v1329_v6 = vld [vmem:[%s1544_s9 + $0x84] ss:$8 sps:$4 sm:$0xff]   ;;  %1054 = vmatprep.mubr.msk.bf16.mxu0 %vm484_vm0, %v1326_v5  ;;  %v1327_v14 = vld [vmem:[%s1544_s9 + $0x80] ss:$8 sps:$4 sm:$0xff]   ;;  %v1332_v16 = vld [vmem:[%s1544_s9 + $0x94] ss:$8 sps:$4 sm:$0xff]  }
  0x1b   : > { %1062 = vmatprep.mubr.msk.bf16.mxu1 %vm484_vm0, %v1329_v6  ;;  %v1334_v17 = vld [vmem:[%s1544_s9 + $0x10] ss:$8 sps:$4 sm:$0xff]   ;;  %v1336_v19 = vld [vmem:[%s1544_s9 + $0x24] ss:$8 sps:$4 sm:$0xff]   ;;  %v1340_v21 = vld [vmem:[%s1544_s9 + $0x20] ss:$8 sps:$4 sm:$0xff]  }
  0x1c   : > { %540 = vmatpush1.bf16.msra.mxu0 %v1317_v4  ;;  %1249 = vmatpush1.bf16.msra.mxu1 %v1317_v4  ;;  %v1335_v18 = vld [vmem:[%s1544_s9 + $0x90] ss:$8 sps:$4 sm:$0xff]   ;;  %v1338_v20 = vld [vmem:[%s1544_s9 + $0xa4] ss:$8 sps:$4 sm:$0xff]   ;;  %v1341_v22 = vld [vmem:[%s1544_s9 + $0xa0] ss:$8 sps:$4 sm:$0xff]  }
  0x1d   : > { %541 = vmatprep.subr.bf16.mxu0 %v1452_v1  ;;  %1240 = vmatprep.subr.bf16.mxu1 %v1452_v1  ;;  %v1342_v23 = vld [vmem:[%s1544_s9 + $0x34] ss:$8 sps:$4 sm:$0xff]   ;;  %v1346_v25 = vld [vmem:[%s1544_s9 + $0x30] ss:$8 sps:$4 sm:$0xff]   ;;  %v1348_v27 = vld [vmem:[%s1544_s9 + $0x44] ss:$8 sps:$4 sm:$0xff]  }
  0x1e   : > { %v1344_v24 = vld [vmem:[%s1544_s9 + $0xb4] ss:$8 sps:$4 sm:$0xff]   ;;  %v1347_v26 = vld [vmem:[%s1544_s9 + $0xb0] ss:$8 sps:$4 sm:$0xff]   ;;  %v1350_v28 = vld [vmem:[%s1544_s9 + $0xc4] ss:$8 sps:$4 sm:$0xff]  }
  0x1f   : > { %v1352_v29 = vld [vmem:[%s1544_s9 + $0x40] ss:$8 sps:$4 sm:$0xff]   ;;  %v1354_v31 = vld [vmem:[%s1544_s9 + $0x54] ss:$8 sps:$4 sm:$0xff]   ;;  %v1358_v33 = vld [vmem:[%s1544_s9 + $0x50] ss:$8 sps:$4 sm:$0xff]  }
  0x20   : > { %542 = vmatpush1.bf16.msra.mxu0 %v1318_v7  ;;  %1250 = vmatpush1.bf16.msra.mxu1 %v1318_v7  ;;  %v1353_v30 = vld [vmem:[%s1544_s9 + $0xc0] ss:$8 sps:$4 sm:$0xff]   ;;  %v1356_v32 = vld [vmem:[%s1544_s9 + $0xd4] ss:$8 sps:$4 sm:$0xff]   ;;  %v1359_v34 = vld [vmem:[%s1544_s9 + $0xd0] ss:$8 sps:$4 sm:$0xff]  }
  0x21   : > { %543 = vmatprep.subr.bf16.mxu0 %v1452_v1  ;;  %1241 = vmatprep.subr.bf16.mxu1 %v1452_v1  ;;  %v1360_v35 = vld [vmem:[%s1544_s9 + $0x64] ss:$8 sps:$4 sm:$0xff]   ;;  %v1364_v37 = vld [vmem:[%s1544_s9 + $0x60] ss:$8 sps:$4 sm:$0xff]   ;;  %v1366_v39 = vld [vmem:[%s1544_s9 + $0x74] ss:$8 sps:$4 sm:$0xff]  }
  0x22   : > { %v1362_v36 = vld [vmem:[%s1544_s9 + $0xe4] ss:$8 sps:$4 sm:$0xff]   ;;  %v1365_v38 = vld [vmem:[%s1544_s9 + $0xe0] ss:$8 sps:$4 sm:$0xff]   ;;  %v1368_v40 = vld [vmem:[%s1544_s9 + $0xf4] ss:$8 sps:$4 sm:$0xff]  }
  0x23   : > { %v1370_v41 = vld [vmem:[%s1544_s9 + $0x70] ss:$8 sps:$4 sm:$0xff]   ;;  %s1378_s30 = scalar_lea.vmem %s1377_s29, 4096 }
  0x24   : > { %544 = vmatpush1.bf16.msra.mxu0 %v1319_v8  ;;  %1251 = vmatpush1.bf16.msra.mxu1 %v1319_v8  ;;  %v1371_v42 = vld [vmem:[%s1544_s9 + $0xf0] ss:$8 sps:$4 sm:$0xff]   ;;  %s1007_s9 = sshll.u32 %s202_s10, 7 }
  0x25   : > { %545 = vmatprep.subr.bf16.mxu0 %v1452_v1  ;;  %1242 = vmatprep.subr.bf16.mxu1 %v1452_v1  ;;  %s1627_s11 = scalar_lea.vmem [#allocation2], %s1007_s9 }
  0x26   : > { %s901_s19 = sshll.u32 %s1627_s11, 4  ;;  %s1678_s19 = int_to_ptr.vmem [resolvable:$true] %s901_s19 }
  0x27   : > { %s1372_s27 = scalar_lea.vmem %s1678_s19, 2048  ;;  %p1379_p1 = scmp.lt.s32.totalorder %s1678_s19, %s1377_s29 }
  0x28   : > { %546 = vmatpush1.bf16.msra.mxu0 %v1320_v9  ;;  %1252 = vmatpush1.bf16.msra.mxu1 %v1320_v9  ;;  %p1373_p12 = scmp.ne.s32.totalorder %s1678_s19, %s1372_s27  ;;  %p1380_p2 = scmp.lt.s32.totalorder %s1378_s30, %s1372_s27 }
  0x29   : > { %547 = vmatprep.subr.bf16.mxu0 %v1452_v1  ;;  %1243 = vmatprep.subr.bf16.mxu1 %v1452_v1 }
  0x2a   : > { %p1374_p13 = pnand %p1373_p12, %p1516_p4  ;;  %p1381_p3 = por %p1380_p2, %p1379_p1 }
  0x2c   : > { %548 = vmatpush1.bf16.msra.mxu0 %v1321_v10  ;;  %1253 = vmatpush1.bf16.msra.mxu1 %v1321_v10  ;;  %p1375_p0 = pneg %p1374_p13 }
  0x2d   : > { %549 = vmatprep.subr.bf16.mxu0 %v1452_v1  ;;  %1244 = vmatprep.subr.bf16.mxu1 %v1452_v1 }
  0x2e   : > { %p1382_p5 = pnand %p1381_p3, %p1375_p0 }
  0x30   : > { %550 = vmatpush1.bf16.msra.mxu0 %v1322_v11  ;;  %1254 = vmatpush1.bf16.msra.mxu1 %v1322_v11 }
  0x31   : > { %551 = vmatprep.subr.bf16.mxu0 %v1452_v1  ;;  %1245 = vmatprep.subr.bf16.mxu1 %v1452_v1 }
  0x34   : > { %552 = vmatpush1.bf16.msra.mxu0 %v1323_v12  ;;  %1255 = vmatpush1.bf16.msra.mxu1 %v1323_v12 }
  0x37   : > { %566 = vmatmul.mubr.bf16.vlgmr.msra.gmra.mrb[0].mxu0 %v1324_v13  ;;  %630 = vmatmul.mubr.bf16.vlgmr.msra.gmra.mrb[0].mxu1 %v1327_v14 }
  0x38   : > { %1055 = vmatprep.mubr.msk.bf16.mxu0 %vm484_vm0, %v1330_v15  ;;  %1063 = vmatprep.mubr.msk.bf16.mxu1 %vm484_vm0, %v1332_v16 }
  0x3f   : > { %574 = vmatmul.mubr.bf16.gmra.mrb[4].mxu0 %v1334_v17  ;;  %638 = vmatmul.mubr.bf16.gmra.mrb[4].mxu1 %v1335_v18 }
  0x40   : > { %1056 = vmatprep.mubr.msk.bf16.mxu0 %vm484_vm0, %v1336_v19  ;;  %1064 = vmatprep.mubr.msk.bf16.mxu1 %vm484_vm0, %v1338_v20 }
  0x47   : > { %582 = vmatmul.mubr.bf16.gmra.mrb[8].mxu0 %v1340_v21  ;;  %646 = vmatmul.mubr.bf16.gmra.mrb[8].mxu1 %v1341_v22 }
  0x48   : > { %1057 = vmatprep.mubr.msk.bf16.mxu0 %vm484_vm0, %v1342_v23  ;;  %1065 = vmatprep.mubr.msk.bf16.mxu1 %vm484_vm0, %v1344_v24 }
  0x4f   : > { %590 = vmatmul.mubr.bf16.gmra.mrb[12].mxu0 %v1346_v25  ;;  %654 = vmatmul.mubr.bf16.gmra.mrb[12].mxu1 %v1347_v26 }
  0x50   : > { %1058 = vmatprep.mubr.msk.bf16.mxu0 %vm484_vm0, %v1348_v27  ;;  %1066 = vmatprep.mubr.msk.bf16.mxu1 %vm484_vm0, %v1350_v28 }
  0x57   : > { %598 = vmatmul.mubr.bf16.gmra.mrb[16].mxu0 %v1352_v29  ;;  %662 = vmatmul.mubr.bf16.gmra.mrb[16].mxu1 %v1353_v30 }
  0x58   : > { %1059 = vmatprep.mubr.msk.bf16.mxu0 %vm484_vm0, %v1354_v31  ;;  %1067 = vmatprep.mubr.msk.bf16.mxu1 %vm484_vm0, %v1356_v32 }
  0x5f   : > { %606 = vmatmul.mubr.bf16.gmra.mrb[20].mxu0 %v1358_v33  ;;  %670 = vmatmul.mubr.bf16.gmra.mrb[20].mxu1 %v1359_v34 }
  0x60   : > { %1060 = vmatprep.mubr.msk.bf16.mxu0 %vm484_vm0, %v1360_v35  ;;  %1068 = vmatprep.mubr.msk.bf16.mxu1 %vm484_vm0, %v1362_v36 }
  0x67   : > { %614 = vmatmul.mubr.bf16.gmra.mrb[24].mxu0 %v1364_v37  ;;  %678 = vmatmul.mubr.bf16.gmra.mrb[24].mxu1 %v1365_v38 }
  0x68   : > { %1061 = vmatprep.mubr.msk.bf16.mxu0 %vm484_vm0, %v1366_v39  ;;  %1069 = vmatprep.mubr.msk.bf16.mxu1 %vm484_vm0, %v1368_v40 }
  0x6f   : > { %622 = vmatmul.mubr.bf16.gmra.mrb[28].mxu0 %v1370_v41  ;;  %686 = vmatmul.mubr.bf16.gmra.mrb[28].mxu1 %v1371_v42 }
 0x10a   : > { %v567_v44 = vpop.f32.mrb[0].mxu0  ;;  %v631_v45 = vpop.f32.mrb[0].mxu1 }
 0x10b   : > { %v568_v46 = vadd.f32 %v1618_v43, %v567_v44  ;;  %v632_v47 = vadd.f32 %v1618_v43, %v631_v45  ;;  %v569_v48 = vpop.f32.mrb[1].mxu0  ;;  %v633_v49 = vpop.f32.mrb[1].mxu1 }
 0x10c   : > { %v570_v50 = vpop.f32.mrb[2].mxu0  ;;  %v634_v51 = vpop.f32.mrb[2].mxu1 }
 0x10d   : > { %v571_v52 = vadd.f32 %v1618_v43, %v570_v50  ;;  %v635_v53 = vadd.f32 %v1618_v43, %v634_v51  ;;  %v572_v54 = vpop.f32.mrb[3].mxu0  ;;  %v636_v55 = vpop.f32.mrb[3].mxu1  ;;  %v694_v56 = vmax.f32 %v568_v46, 0.0  ;;  %v710_v57 = vmax.f32 %v632_v47, 0.0 }
 0x10f   : > { %v695_v58 = vmax.f32 %v571_v52, 0.0  ;;  %v711_v59 = vmax.f32 %v635_v53, 0.0 }
 0x111   : > { %v1144_v60 = vpack.c.bf16 %v695_v58, %v694_v56  ;;  %v1184_v61 = vpack.c.bf16 %v711_v59, %v710_v57 }
 0x112   : > { %v575_v62 = vpop.f32.mrb[4].mxu0  ;;  %v639_v63 = vpop.f32.mrb[4].mxu1 }
 0x113   : > { %1145 = vst [vmem:[%s1627_s11] sm:$0xff] %v1144_v60   ;;  %1228 = vst [vmem:[%s1627_s11 + $0x40] sm:$0xff] %v1184_v61   ;;  %v576_v0 = vadd.f32 %v1618_v43, %v575_v62  ;;  %v640_v1 = vadd.f32 %v1618_v43, %v639_v63  ;;  %v577_v2 = vpop.f32.mrb[5].mxu0  ;;  %v641_v3 = vpop.f32.mrb[5].mxu1 }
 0x114   : > { %v578_v4 = vpop.f32.mrb[6].mxu0  ;;  %v642_v5 = vpop.f32.mrb[6].mxu1 }
 0x115   : > { %v579_v6 = vadd.f32 %v1618_v43, %v578_v4  ;;  %v643_v7 = vadd.f32 %v1618_v43, %v642_v5  ;;  %v580_v8 = vpop.f32.mrb[7].mxu0  ;;  %v644_v9 = vpop.f32.mrb[7].mxu1  ;;  %v696_v10 = vmax.f32 %v576_v0, 0.0  ;;  %v712_v11 = vmax.f32 %v640_v1, 0.0 }
 0x117   : > { %v697_v12 = vmax.f32 %v579_v6, 0.0  ;;  %v713_v13 = vmax.f32 %v643_v7, 0.0 }
 0x119   : > { %v1149_v14 = vpack.c.bf16 %v697_v12, %v696_v10  ;;  %v1189_v15 = vpack.c.bf16 %v713_v13, %v712_v11 }
 0x11a   : > { %v583_v16 = vpop.f32.mrb[8].mxu0  ;;  %v647_v17 = vpop.f32.mrb[8].mxu1 }
 0x11b   : > { %1221 = vst [vmem:[%s1627_s11 + $0x8] sm:$0xff] %v1149_v14   ;;  %1229 = vst [vmem:[%s1627_s11 + $0x48] sm:$0xff] %v1189_v15   ;;  %v584_v18 = vadd.f32 %v1618_v43, %v583_v16  ;;  %v648_v19 = vadd.f32 %v1618_v43, %v647_v17  ;;  %v585_v20 = vpop.f32.mrb[9].mxu0  ;;  %v649_v21 = vpop.f32.mrb[9].mxu1 }
 0x11c   : > { %v586_v22 = vpop.f32.mrb[10].mxu0  ;;  %v650_v23 = vpop.f32.mrb[10].mxu1 }
 0x11d   : > { %v587_v24 = vadd.f32 %v1618_v43, %v586_v22  ;;  %v651_v25 = vadd.f32 %v1618_v43, %v650_v23  ;;  %v588_v26 = vpop.f32.mrb[11].mxu0  ;;  %v652_v27 = vpop.f32.mrb[11].mxu1  ;;  %v698_v28 = vmax.f32 %v584_v18, 0.0  ;;  %v714_v29 = vmax.f32 %v648_v19, 0.0 }
 0x11f   : > { %v699_v30 = vmax.f32 %v587_v24, 0.0  ;;  %v715_v31 = vmax.f32 %v651_v25, 0.0 }
 0x121   : > { %v1154_v32 = vpack.c.bf16 %v699_v30, %v698_v28  ;;  %v1194_v33 = vpack.c.bf16 %v715_v31, %v714_v29 }
 0x122   : > { %v591_v34 = vpop.f32.mrb[12].mxu0  ;;  %v655_v35 = vpop.f32.mrb[12].mxu1 }
 0x123   : > { %1222 = vst [vmem:[%s1627_s11 + $0x10] sm:$0xff] %v1154_v32   ;;  %1230 = vst [vmem:[%s1627_s11 + $0x50] sm:$0xff] %v1194_v33   ;;  %v592_v36 = vadd.f32 %v1618_v43, %v591_v34  ;;  %v656_v37 = vadd.f32 %v1618_v43, %v655_v35  ;;  %v593_v38 = vpop.f32.mrb[13].mxu0  ;;  %v657_v39 = vpop.f32.mrb[13].mxu1 }
 0x124   : > { %v594_v40 = vpop.f32.mrb[14].mxu0  ;;  %v658_v41 = vpop.f32.mrb[14].mxu1 }
 0x125   : > { %v595_v42 = vadd.f32 %v1618_v43, %v594_v40  ;;  %v659_v44 = vadd.f32 %v1618_v43, %v658_v41  ;;  %v596_v45 = vpop.f32.mrb[15].mxu0  ;;  %v660_v46 = vpop.f32.mrb[15].mxu1  ;;  %v700_v47 = vmax.f32 %v592_v36, 0.0  ;;  %v716_v48 = vmax.f32 %v656_v37, 0.0 }
 0x127   : > { %v701_v49 = vmax.f32 %v595_v42, 0.0  ;;  %v717_v50 = vmax.f32 %v659_v44, 0.0 }
 0x129   : > { %v1159_v51 = vpack.c.bf16 %v701_v49, %v700_v47  ;;  %v1199_v52 = vpack.c.bf16 %v717_v50, %v716_v48 }
 0x12a   : > { %v599_v53 = vpop.f32.mrb[16].mxu0  ;;  %v663_v54 = vpop.f32.mrb[16].mxu1 }
 0x12b   : > { %1223 = vst [vmem:[%s1627_s11 + $0x18] sm:$0xff] %v1159_v51   ;;  %1231 = vst [vmem:[%s1627_s11 + $0x58] sm:$0xff] %v1199_v52   ;;  %v600_v55 = vadd.f32 %v1618_v43, %v599_v53  ;;  %v664_v56 = vadd.f32 %v1618_v43, %v663_v54  ;;  %v601_v57 = vpop.f32.mrb[17].mxu0  ;;  %v665_v58 = vpop.f32.mrb[17].mxu1 }
 0x12c   : > { %v602_v59 = vpop.f32.mrb[18].mxu0  ;;  %v666_v60 = vpop.f32.mrb[18].mxu1 }
 0x12d   : > { %v603_v61 = vadd.f32 %v1618_v43, %v602_v59  ;;  %v667_v62 = vadd.f32 %v1618_v43, %v666_v60  ;;  %v604_v63 = vpop.f32.mrb[19].mxu0  ;;  %v668_v0 = vpop.f32.mrb[19].mxu1  ;;  %v702_v1 = vmax.f32 %v600_v55, 0.0  ;;  %v718_v2 = vmax.f32 %v664_v56, 0.0 }
 0x12f   : > { %v703_v3 = vmax.f32 %v603_v61, 0.0  ;;  %v719_v4 = vmax.f32 %v667_v62, 0.0 }
 0x131   : > { %v1164_v5 = vpack.c.bf16 %v703_v3, %v702_v1  ;;  %v1204_v6 = vpack.c.bf16 %v719_v4, %v718_v2 }
 0x132   : > { %v607_v7 = vpop.f32.mrb[20].mxu0  ;;  %v671_v8 = vpop.f32.mrb[20].mxu1 }
 0x133   : > { %1224 = vst [vmem:[%s1627_s11 + $0x20] sm:$0xff] %v1164_v5   ;;  %1232 = vst [vmem:[%s1627_s11 + $0x60] sm:$0xff] %v1204_v6   ;;  %v608_v9 = vadd.f32 %v1618_v43, %v607_v7  ;;  %v672_v10 = vadd.f32 %v1618_v43, %v671_v8  ;;  %v609_v11 = vpop.f32.mrb[21].mxu0  ;;  %v673_v12 = vpop.f32.mrb[21].mxu1 }
 0x134   : > { %v610_v13 = vpop.f32.mrb[22].mxu0  ;;  %v674_v14 = vpop.f32.mrb[22].mxu1 }
 0x135   : > { %v611_v15 = vadd.f32 %v1618_v43, %v610_v13  ;;  %v675_v16 = vadd.f32 %v1618_v43, %v674_v14  ;;  %v612_v17 = vpop.f32.mrb[23].mxu0  ;;  %v676_v18 = vpop.f32.mrb[23].mxu1  ;;  %v704_v19 = vmax.f32 %v608_v9, 0.0  ;;  %v720_v20 = vmax.f32 %v672_v10, 0.0 }
 0x137   : > { %v705_v21 = vmax.f32 %v611_v15, 0.0  ;;  %v721_v22 = vmax.f32 %v675_v16, 0.0 }
 0x139   : > { %v1169_v23 = vpack.c.bf16 %v705_v21, %v704_v19  ;;  %v1209_v24 = vpack.c.bf16 %v721_v22, %v720_v20 }
 0x13a   : > { %v615_v25 = vpop.f32.mrb[24].mxu0  ;;  %v679_v26 = vpop.f32.mrb[24].mxu1 }
 0x13b   : > { %1225 = vst [vmem:[%s1627_s11 + $0x28] sm:$0xff] %v1169_v23   ;;  %1233 = vst [vmem:[%s1627_s11 + $0x68] sm:$0xff] %v1209_v24   ;;  %v616_v27 = vadd.f32 %v1618_v43, %v615_v25  ;;  %v680_v28 = vadd.f32 %v1618_v43, %v679_v26  ;;  %v617_v29 = vpop.f32.mrb[25].mxu0  ;;  %v681_v30 = vpop.f32.mrb[25].mxu1 }
 0x13c   : > { %v618_v31 = vpop.f32.mrb[26].mxu0  ;;  %v682_v32 = vpop.f32.mrb[26].mxu1 }
 0x13d   : > { %v619_v33 = vadd.f32 %v1618_v43, %v618_v31  ;;  %v683_v34 = vadd.f32 %v1618_v43, %v682_v32  ;;  %v620_v35 = vpop.f32.mrb[27].mxu0  ;;  %v684_v36 = vpop.f32.mrb[27].mxu1  ;;  %v706_v37 = vmax.f32 %v616_v27, 0.0  ;;  %v722_v38 = vmax.f32 %v680_v28, 0.0 }
 0x13f   : > { %v707_v39 = vmax.f32 %v619_v33, 0.0  ;;  %v723_v40 = vmax.f32 %v683_v34, 0.0 }
 0x141   : > { %v1174_v41 = vpack.c.bf16 %v707_v39, %v706_v37  ;;  %v1214_v42 = vpack.c.bf16 %v723_v40, %v722_v38 }
 0x142   : > { %v623_v44 = vpop.f32.mrb[28].mxu0  ;;  %v687_v45 = vpop.f32.mrb[28].mxu1 }
 0x143   : > { %1226 = vst [vmem:[%s1627_s11 + $0x30] sm:$0xff] %v1174_v41   ;;  %1234 = vst [vmem:[%s1627_s11 + $0x70] sm:$0xff] %v1214_v42   ;;  %v624_v46 = vadd.f32 %v1618_v43, %v623_v44  ;;  %v688_v47 = vadd.f32 %v1618_v43, %v687_v45  ;;  %v625_v48 = vpop.f32.mrb[29].mxu0  ;;  %v689_v49 = vpop.f32.mrb[29].mxu1 }
 0x144   : > { %v626_v50 = vpop.f32.mrb[30].mxu0  ;;  %v690_v51 = vpop.f32.mrb[30].mxu1 }
 0x145   : > { %v627_v52 = vadd.f32 %v1618_v43, %v626_v50  ;;  %v691_v53 = vadd.f32 %v1618_v43, %v690_v51  ;;  %v628_v54 = vpop.f32.mrb[31].mxu0  ;;  %v692_v55 = vpop.f32.mrb[31].mxu1  ;;  %v708_v56 = vmax.f32 %v624_v46, 0.0  ;;  %v724_v57 = vmax.f32 %v688_v47, 0.0 }
 0x147   : > { %v709_v58 = vmax.f32 %v627_v52, 0.0  ;;  %v725_v59 = vmax.f32 %v691_v53, 0.0 }
 0x149   : > { %v1179_v43 = vpack.c.bf16 %v709_v58, %v708_v56  ;;  %v1219_v60 = vpack.c.bf16 %v725_v59, %v724_v57 }
 0x14b   : > { %1227 = vst [vmem:[%s1627_s11 + $0x38] sm:$0xff] %v1179_v43   ;;  %1235 = vst [vmem:[%s1627_s11 + $0x78] sm:$0xff] %v1219_v60  }
 0x14c   : > { %1385 = shalt.err (!%p1382_p5)
}
 0x14d   : > { %s1386_s4 = scalar_lea.hbm %s1676_s26, 2048  ;;  %s1390_s7 = scalar_lea.hbm %s1733_s3, 4096 }
 0x14e   : > { %p1387_p6 = scmp.ne.s32.totalorder %s1676_s26, %s1386_s4  ;;  %p1391_p10 = scmp.lt.u32.totalorder %s1676_s26, %s1733_s3 }
 0x14f   : > { %p1392_p11 = scmp.lt.u32.totalorder %s1390_s7, %s1386_s4  ;;  %p1394_p13 = scmp.lt.u32.totalorder %s1386_s4, %s1676_s26 }
 0x150   : > { %p1388_p7 = pnand %p1387_p6, %p1516_p4 }
 0x151   : > { %p1393_p12 = por %p1392_p11, %p1391_p10 }
 0x152   : > { %p1389_p9 = pneg %p1388_p7 }
 0x153   : > { %p1395_p0 = por %p1394_p13, %p1393_p12 }
 0x155   : > { %p1396_p1 = pnand %p1395_p0, %p1389_p9 }
 0x157   : > { %1399 = shalt.err (!%p1396_p1)
}
 0x158   : > { %s1454_s9 = smov 64   ;;  %s1455_s11 = smov 4  }
 0x159   : > { %1256 = dma.vmem_to_hbm [thread:$0]  (%p1516_p4), %s1678_s19, 2048, %s1676_s26, %s1684_s15, %s1454_s9, %s1454_s9, %s1455_s11  }
 0x15a PF: > { %p1262_p2 = scmp.ge.s32.totalorder %s1450_s17, 2  ;;  %s916_s18 = sand.u32 1, %s1430_s12  }
 0x15b   : > { %s917_s21 = scalar_lea.sflag [#allocation3], %s916_s18 }
 0x15c   : > { %p1259_p3 = pnand %p1262_p2, %p1523_p8 }
 0x15e   : > { %1425 = dma.done.wait (!%p1259_p3), %s917_s21, 2048  }
 0x15f   : > { %1427 = vsyncadd (!%p1259_p3), %s917_s21, 4294965248  ;;  %s16_s17 = sadd.s32 1, %s1450_s17   ;;  %s1736_s12 = smov %s1434_s13 }
 0x160   : > { %p13_p5 = scmp.ge.s32.totalorder %s16_s17, 4   ;;  %s1737_s13 = smov %s1438_s14 }
 0x161   : > { %s1738_s14 = smov %s1529_s25  ;;  %s1739_s15 = smov %s1446_s16 }
 0x162   : > { %s1740_s16 = smov %s1742_s20  ;;  %15 = sbr.rel (!%p13_p5) target bundleno = 4 (0x4), region = 73 }
 0x169   :  { %922 = vsyncpa [#allocation3], 1 }
 0x16a   :  { %924 = vsyncpa [#allocation3 + $0x1], 1 }

</bundles_post_ra>
